<compile_context>
chip_gen: v6e
topology: v6e:2x2x1
jax: 0.10.0
libtpu: 0.0.40
codegen_flags: <defaults>
</compile_context>

<pallas_src>
import numpy as np
import jax
import jax.numpy as jnp
from jax.experimental import pallas as pl
from jax.experimental.pallas import tpu as pltpu


def _round_up(a, b):
    return ((a + b - 1) // b) * b


def _dpca_detect_kernel(x_ref, xnext_ref, mean_ref, comp_ref, oneD_ref, ivar_ref,
                        res_ref, t2_ref, win_ref):
    """One sample-tile of the DPCA detect pass; lag structure built in VMEM.

    x_ref:     [TILE_N, F]        raw test-data rows of this tile
    xnext_ref: [LAG_PAD, F]       first LAG_PAD rows of the next tile (lag overlap)
    mean_ref:  [L+1, F]           folded centering (train mean + PCA mean_), per lag
    comp_ref:  [L+1, K, F]        PCA components_ split per lag (= comp[:, l*F:(l+1)*F])
    oneD_ref:  [1, F]             constant 1/D row weights (host precomputed)
    ivar_ref:  [1, K]             1/explained_variance_ (host precomputed)
    res_ref:   [1, TILE_N]        reconstruction residual (lane-dense row)
    t2_ref:    [1, TILE_N]        Hotelling's T^2        (lane-dense row)
    win_ref:   [TILE_N+LAG_PAD,F] VMEM scratch holding this tile's lag window
    """
    tn = x_ref.shape[0]
    f = x_ref.shape[1]
    lags_p1 = mean_ref.shape[0]
    k = comp_ref.shape[1]

    # Assemble the overlapping lag window once in VMEM.
    win_ref[0:tn, :] = x_ref[...]
    win_ref[tn:, :] = xnext_ref[...]

    # Pass 1 — PCA.transform as a sum of per-lag contractions:
    #   score[r] = sum_l (x[r+l] - mean_l) @ comp_l.T
    score = jnp.zeros((tn, k), dtype=jnp.float32)
    for l in range(lags_p1):
        yl = win_ref[l:l + tn, :] - mean_ref[l:l + 1, :]
        score = score + jax.lax.dot_general(
            yl, comp_ref[l], (((1,), (1,)), ((), ())),
            preferred_element_type=jnp.float32)

    # Pass 2 — explicit inverse_transform + residual (matches original formula):
    #   sq[r, f] = sum_l ((x[r+l] - mean_l) - score[r] @ comp_l)^2
    sq = jnp.zeros((tn, f), dtype=jnp.float32)
    for l in range(lags_p1):
        yl = win_ref[l:l + tn, :] - mean_ref[l:l + 1, :]
        rec_l = jax.lax.dot_general(
            score, comp_ref[l], (((1,), (0,)), ((), ())),
            preferred_element_type=jnp.float32)
        d = yl - rec_l
        sq = sq + d * d

    # Lane-dense [1, TILE_N] statistics via tiny MXU contractions (no masked
    # [N,1] partial stores, no XLU column->row relayout).
    res_ref[...] = jax.lax.dot_general(
        oneD_ref[...], sq, (((1,), (1,)), ((), ())),
        preferred_element_type=jnp.float32)
    t2_ref[...] = jax.lax.dot_general(
        ivar_ref[...], score * score, (((1,), (1,)), ((), ())),
        preferred_element_type=jnp.float32)


def dpca_forward(x, params, time_lags):
    """x: [n_samples, n_features] float32. Returns (res, t2), each [n_samples - time_lags]."""
    n, F = x.shape
    L = int(time_lags)
    N = n - L                              # number of valid lagged rows
    D = F * (L + 1)

    comp = params["components"].astype(jnp.float32)                   # [K, D]
    K = comp.shape[0]
    # Per-lag parameter layout (host-side, tiny):
    comp_lag = comp.reshape(K, L + 1, F).transpose(1, 0, 2)           # [L+1, K, F]
    mean_total = (params["mean"] + params["pca_mean"]).astype(jnp.float32).reshape(L + 1, F)
    inv_var = (1.0 / params["explained_variance"].astype(jnp.float32)).reshape(1, K)
    one_over_d = jnp.full((1, F), 1.0 / D, dtype=jnp.float32)

    # ---- tile sizing: bytes-based against the VMEM budget ----
    lane = 128
    f_lanes = _round_up(F, lane)
    k_lanes = _round_up(K, lane)
    # rough per-row VMEM footprint: 2x (double-buffered x tile) + window scratch
    # + yl/rec/diff/sq temporaries (F-wide) + score/score^2 (K-wide), all f32,
    # lane-padded.
    per_row_bytes = 4 * (7 * f_lanes + 2 * k_lanes)
    target_stream_bytes = 6 * 1024 * 1024     # well under v7x's 64 MiB (32 MiB scoped)
    TILE_N = (target_stream_bytes // per_row_bytes) // lane * lane
    TILE_N = int(max(lane, min(TILE_N, 2048)))

    LAG_PAD = 8
    while LAG_PAD < L:
        LAG_PAD *= 2

    n_rows_128 = _round_up(max(N, 1), lane)
    TILE_N = min(TILE_N, n_rows_128)
    # keep >=2 grid steps when there is enough data (v7x has 2 TensorCores)
    if n_rows_128 >= 2 * lane:
        TILE_N = min(TILE_N, _round_up(n_rows_128 // 2, lane))
    TILE_N = _round_up(TILE_N, LAG_PAD)       # index-map divisibility (L > 128 case)

    N_pad = _round_up(max(N, 1), TILE_N)
    grid = (N_pad // TILE_N,)

    # Pad raw x so every block (including the LAG_PAD-row lag-overlap block of
    # the last tile) is fully in bounds.  The kernel then reads x essentially
    # once, instead of the (lags+1)x read plus an N*D HBM round trip that a
    # materialized lagged matrix would cost.
    x = x.astype(jnp.float32)
    x_rows = N_pad + LAG_PAD
    if x_rows > n:
        x = jnp.pad(x, ((0, x_rows - n), (0, 0)))

    stream_bytes = per_row_bytes * TILE_N
    const_bytes = 4 * 2 * ((L + 1) * (K + 1) * f_lanes + f_lanes + k_lanes)
    vmem_limit = int(min(48 * 1024 * 1024,
                         max(32 * 1024 * 1024, 2 * stream_bytes + const_bytes)))

    flops = 4.0 * N_pad * D * K + 8.0 * N_pad * D
    bytes_accessed = 4 * (N_pad * F + grid[0] * LAG_PAD * F
                          + (L + 1) * (K + 1) * F + F + K + 2 * N_pad)

    res_row, t2_row = pl.pallas_call(
        _dpca_detect_kernel,
        out_shape=(jax.ShapeDtypeStruct((1, N_pad), jnp.float32),
                   jax.ShapeDtypeStruct((1, N_pad), jnp.float32)),
        grid=grid,
        in_specs=[
            pl.BlockSpec((TILE_N, F), lambda i: (i, 0)),                      # this tile's rows
            pl.BlockSpec((LAG_PAD, F),
                         lambda i: ((i + 1) * (TILE_N // LAG_PAD), 0)),       # lag-overlap rows
            pl.BlockSpec((L + 1, F), lambda i: (0, 0)),                       # folded mean, per lag
            pl.BlockSpec((L + 1, K, F), lambda i: (0, 0, 0)),                 # components, per lag
            pl.BlockSpec((1, F), lambda i: (0, 0)),                           # 1/D row weights
            pl.BlockSpec((1, K), lambda i: (0, 0)),                           # 1/explained_variance
        ],
        out_specs=(pl.BlockSpec((1, TILE_N), lambda i: (0, i)),
                   pl.BlockSpec((1, TILE_N), lambda i: (0, i))),
        scratch_shapes=[pltpu.VMEM((TILE_N + LAG_PAD, F), jnp.float32)],
        compiler_params=pltpu.CompilerParams(
            dimension_semantics=("parallel",),
            vmem_limit_bytes=vmem_limit),
        cost_estimate=pl.CostEstimate(
            flops=int(flops), transcendentals=0, bytes_accessed=int(bytes_accessed)),
    )(x, x, mean_total, comp_lag, one_over_d, inv_var)
    return res_row[0, :N], t2_row[0, :N]


def _make_params(key, n_features, time_lags, n_components):
    """Deterministic synthetic DPCA parameters (stand-in for the sklearn fit)."""
    D = n_features * (time_lags + 1)
    k_mean, k_comp, k_var = jax.random.split(key, 3)
    mean = jax.random.normal(k_mean, (D,), dtype=jnp.float32) * 0.1
    # orthonormal principal directions via QR (matches sklearn PCA components_)
    q, _ = jnp.linalg.qr(jax.random.normal(k_comp, (D, D), dtype=jnp.float32))
    components = q[:n_components, :].astype(jnp.float32)              # [K, D]
    explained_variance = jnp.linspace(2.0, 0.5, n_components, dtype=jnp.float32)
    pca_mean = jnp.zeros((D,), dtype=jnp.float32)  # PCA fit on pre-centered data
    return {"mean": mean, "pca_mean": pca_mean,
            "components": components, "explained_variance": explained_variance}


def _reference_numpy(x, params, time_lags):
    """Full original formula (explicit reconstruction), for validation."""
    x = np.asarray(x, np.float32)
    n = x.shape[0]
    lagged = np.concatenate(
        [x[i:n - time_lags + i, :] for i in range(time_lags + 1)], axis=1)
    mean = np.asarray(params["mean"])
    pca_mean = np.asarray(params["pca_mean"])
    comp = np.asarray(params["components"])
    var = np.asarray(params["explained_variance"])
    xc = lagged - mean
    score = (xc - pca_mean) @ comp.T
    rec = score @ comp + pca_mean
    res = np.mean((xc - rec) ** 2, axis=1)
    t2 = np.sum(score ** 2 / var, axis=1)
    return res, t2


if __name__ == "__main__":
    # TODO(synk): the sklearn PCA fit / cum_ratio component selection (Model.fit)
    # is training-time host code and is not part of the Pallas forward pass.
    key = jax.random.PRNGKey(0)
    k_x, k_p = jax.random.split(key)

    time_lags = 1          # configs.time_lags
    n_features = 16
    n_samples = 65         # -> lagged matrix [64, 32]
    n_components = 8       # stands in for the cum_ratio-selected component count

    x = jax.random.normal(k_x, (n_samples, n_features), dtype=jnp.float32)
    params = _make_params(k_p, n_features, time_lags, n_components)

    res, t2 = jax.jit(lambda xx: dpca_forward(xx, params, time_lags))(x)
    jax.block_until_ready((res, t2))

    res_ref, t2_ref = _reference_numpy(x, params, time_lags)
    assert res.shape == (n_samples - time_lags,)
    assert t2.shape == (n_samples - time_lags,)
    assert np.allclose(np.asarray(res), res_ref, rtol=1e-4, atol=1e-5)
    assert np.allclose(np.asarray(t2), t2_ref, rtol=1e-4, atol=1e-5)

    print("KERNEL_OK")
</pallas_src>

<mosaic_0001>
module attributes {stable_mosaic.version = 11 : i64} {
  func.func @_dpca_detect_kernel(%arg0: i32, %arg1: memref<128x16xf32, #tpu.memory_space<vmem>>, %arg2: memref<8x16xf32, #tpu.memory_space<vmem>>, %arg3: memref<2x16xf32, #tpu.memory_space<vmem>>, %arg4: memref<2x8x16xf32, #tpu.memory_space<vmem>>, %arg5: memref<1x16xf32, #tpu.memory_space<vmem>>, %arg6: memref<1x8xf32, #tpu.memory_space<vmem>>, %arg7: memref<1x128xf32, #tpu.memory_space<vmem>>, %arg8: memref<1x128xf32, #tpu.memory_space<vmem>>, %arg9: memref<136x16xf32, #tpu.memory_space<vmem>>) attributes {dimension_semantics = [#tpu.dimension_semantics<parallel>], iteration_bounds = array<i64: 1>, scalar_prefetch = 0 : i64, scratch_operands = 1 : i64, tpu.core_type = #tpu.core_type<tc>, window_params = [{transform_indices = @transform_0, window_bounds = array<i64: 128, 16>}, {transform_indices = @transform_1, window_bounds = array<i64: 8, 16>}, {pipeline_mode = #tpu.pipeline_mode<synchronous>, transform_indices = @transform_2, window_bounds = array<i64: 2, 16>}, {pipeline_mode = #tpu.pipeline_mode<synchronous>, transform_indices = @transform_3, window_bounds = array<i64: 2, 8, 16>}, {pipeline_mode = #tpu.pipeline_mode<synchronous>, transform_indices = @transform_4, window_bounds = array<i64: 1, 16>}, {pipeline_mode = #tpu.pipeline_mode<synchronous>, transform_indices = @transform_5, window_bounds = array<i64: 1, 8>}, {transform_indices = @transform_6, window_bounds = array<i64: 1, 128>}, {transform_indices = @transform_7, window_bounds = array<i64: 1, 128>}]} {
    %c0 = arith.constant 0 : index
    %c0_0 = arith.constant 0 : index
    %0 = vector.load %arg1[%c0, %c0_0] : memref<128x16xf32, #tpu.memory_space<vmem>>, vector<128x16xf32>
    %c0_1 = arith.constant 0 : index
    %c0_2 = arith.constant 0 : index
    %1 = vector.load %arg9[%c0_1, %c0_2] : memref<136x16xf32, #tpu.memory_space<vmem>>, vector<128x16xf32>
    tpu.vector_store %arg9[%c0_1, %c0_2], %0 {strides = array<i32>} : memref<136x16xf32, #tpu.memory_space<vmem>>, vector<128x16xf32>,
    %c0_3 = arith.constant 0 : index
    %c0_4 = arith.constant 0 : index
    %2 = vector.load %arg2[%c0_3, %c0_4] : memref<8x16xf32, #tpu.memory_space<vmem>>, vector<8x16xf32>
    %c128 = arith.constant 128 : index
    %c0_5 = arith.constant 0 : index
    %3 = vector.load %arg9[%c128, %c0_5] : memref<136x16xf32, #tpu.memory_space<vmem>>, vector<8x16xf32>
    tpu.vector_store %arg9[%c128, %c0_5], %2 {strides = array<i32>} : memref<136x16xf32, #tpu.memory_space<vmem>>, vector<8x16xf32>,
    %cst = arith.constant 0.000000e+00 : f32
    %4 = vector.broadcast %cst : f32 to vector<128x8xf32>
    %c0_6 = arith.constant 0 : index
    %c0_7 = arith.constant 0 : index
    %5 = vector.load %arg9[%c0_6, %c0_7] : memref<136x16xf32, #tpu.memory_space<vmem>>, vector<128x16xf32>
    %c0_8 = arith.constant 0 : index
    %c0_9 = arith.constant 0 : index
    %6 = vector.load %arg3[%c0_8, %c0_9] : memref<2x16xf32, #tpu.memory_space<vmem>>, vector<1x16xf32>
    %7 = vector.broadcast %6 : vector<1x16xf32> to vector<128x16xf32>
    %8 = arith.subf %5, %7 : vector<128x16xf32>
    %c0_10 = arith.constant 0 : index
    %c0_11 = arith.constant 0 : index
    %c0_12 = arith.constant 0 : index
    %9 = vector.load %arg4[%c0_10, %c0_11, %c0_12] : memref<2x8x16xf32, #tpu.memory_space<vmem>>, vector<1x8x16xf32>
    %10 = vector.shape_cast %9 : vector<1x8x16xf32> to vector<8x16xf32>
    %cst_13 = arith.constant dense<0.000000e+00> : vector<128x8xf32>
    %11 = tpu.matmul %8, %10, %cst_13 {dimension_numbers = #tpu.dot_dimension_numbers<[1], [1], [0], [0], [0, 0, 1, 0], [], []>} : vector<128x16xf32>, vector<8x16xf32>, vector<128x8xf32> -> vector<128x8xf32>
    %12 = arith.addf %4, %11 : vector<128x8xf32>
    %c1 = arith.constant 1 : index
    %c0_14 = arith.constant 0 : index
    %13 = vector.load %arg9[%c1, %c0_14] : memref<136x16xf32, #tpu.memory_space<vmem>>, vector<128x16xf32>
    %c1_15 = arith.constant 1 : index
    %c0_16 = arith.constant 0 : index
    %14 = vector.load %arg3[%c1_15, %c0_16] : memref<2x16xf32, #tpu.memory_space<vmem>>, vector<1x16xf32>
    %15 = vector.broadcast %14 : vector<1x16xf32> to vector<128x16xf32>
    %16 = arith.subf %13, %15 : vector<128x16xf32>
    %c1_17 = arith.constant 1 : index
    %c0_18 = arith.constant 0 : index
    %c0_19 = arith.constant 0 : index
    %17 = vector.load %arg4[%c1_17, %c0_18, %c0_19] : memref<2x8x16xf32, #tpu.memory_space<vmem>>, vector<1x8x16xf32>
    %18 = vector.shape_cast %17 : vector<1x8x16xf32> to vector<8x16xf32>
    %cst_20 = arith.constant dense<0.000000e+00> : vector<128x8xf32>
    %19 = tpu.matmul %16, %18, %cst_20 {dimension_numbers = #tpu.dot_dimension_numbers<[1], [1], [0], [0], [0, 0, 1, 0], [], []>} : vector<128x16xf32>, vector<8x16xf32>, vector<128x8xf32> -> vector<128x8xf32>
    %20 = arith.addf %12, %19 : vector<128x8xf32>
    %cst_21 = arith.constant 0.000000e+00 : f32
    %21 = vector.broadcast %cst_21 : f32 to vector<128x16xf32>
    %c0_22 = arith.constant 0 : index
    %c0_23 = arith.constant 0 : index
    %22 = vector.load %arg9[%c0_22, %c0_23] : memref<136x16xf32, #tpu.memory_space<vmem>>, vector<128x16xf32>
    %c0_24 = arith.constant 0 : index
    %c0_25 = arith.constant 0 : index
    %23 = vector.load %arg3[%c0_24, %c0_25] : memref<2x16xf32, #tpu.memory_space<vmem>>, vector<1x16xf32>
    %24 = vector.broadcast %23 : vector<1x16xf32> to vector<128x16xf32>
    %25 = arith.subf %22, %24 : vector<128x16xf32>
    %c0_26 = arith.constant 0 : index
    %c0_27 = arith.constant 0 : index
    %c0_28 = arith.constant 0 : index
    %26 = vector.load %arg4[%c0_26, %c0_27, %c0_28] : memref<2x8x16xf32, #tpu.memory_space<vmem>>, vector<1x8x16xf32>
    %27 = vector.shape_cast %26 : vector<1x8x16xf32> to vector<8x16xf32>
    %cst_29 = arith.constant dense<0.000000e+00> : vector<128x16xf32>
    %28 = tpu.matmul %20, %27, %cst_29 {dimension_numbers = #tpu.dot_dimension_numbers<[1], [0], [0], [1], [0, 0, 1, 1], [], []>} : vector<128x8xf32>, vector<8x16xf32>, vector<128x16xf32> -> vector<128x16xf32>
    %29 = arith.subf %25, %28 : vector<128x16xf32>
    %30 = arith.mulf %29, %29 : vector<128x16xf32>
    %31 = arith.addf %21, %30 : vector<128x16xf32>
    %c1_30 = arith.constant 1 : index
    %c0_31 = arith.constant 0 : index
    %32 = vector.load %arg9[%c1_30, %c0_31] : memref<136x16xf32, #tpu.memory_space<vmem>>, vector<128x16xf32>
    %c1_32 = arith.constant 1 : index
    %c0_33 = arith.constant 0 : index
    %33 = vector.load %arg3[%c1_32, %c0_33] : memref<2x16xf32, #tpu.memory_space<vmem>>, vector<1x16xf32>
    %34 = vector.broadcast %33 : vector<1x16xf32> to vector<128x16xf32>
    %35 = arith.subf %32, %34 : vector<128x16xf32>
    %c1_34 = arith.constant 1 : index
    %c0_35 = arith.constant 0 : index
    %c0_36 = arith.constant 0 : index
    %36 = vector.load %arg4[%c1_34, %c0_35, %c0_36] : memref<2x8x16xf32, #tpu.memory_space<vmem>>, vector<1x8x16xf32>
    %37 = vector.shape_cast %36 : vector<1x8x16xf32> to vector<8x16xf32>
    %cst_37 = arith.constant dense<0.000000e+00> : vector<128x16xf32>
    %38 = tpu.matmul %20, %37, %cst_37 {dimension_numbers = #tpu.dot_dimension_numbers<[1], [0], [0], [1], [0, 0, 1, 1], [], []>} : vector<128x8xf32>, vector<8x16xf32>, vector<128x16xf32> -> vector<128x16xf32>
    %39 = arith.subf %35, %38 : vector<128x16xf32>
    %40 = arith.mulf %39, %39 : vector<128x16xf32>
    %41 = arith.addf %31, %40 : vector<128x16xf32>
    %c0_38 = arith.constant 0 : index
    %c0_39 = arith.constant 0 : index
    %42 = vector.load %arg5[%c0_38, %c0_39] : memref<1x16xf32, #tpu.memory_space<vmem>>, vector<1x16xf32>
    %cst_40 = arith.constant dense<0.000000e+00> : vector<1x128xf32>
    %43 = tpu.matmul %42, %41, %cst_40 {dimension_numbers = #tpu.dot_dimension_numbers<[1], [1], [0], [0], [0, 0, 1, 0], [], []>} : vector<1x16xf32>, vector<128x16xf32>, vector<1x128xf32> -> vector<1x128xf32>
    %c0_41 = arith.constant 0 : index
    %c0_42 = arith.constant 0 : index
    %44 = vector.load %arg7[%c0_41, %c0_42] : memref<1x128xf32, #tpu.memory_space<vmem>>, vector<1x128xf32>
    tpu.vector_store %arg7[%c0_41, %c0_42], %43 {strides = array<i32>} : memref<1x128xf32, #tpu.memory_space<vmem>>, vector<1x128xf32>,
    %c0_43 = arith.constant 0 : index
    %c0_44 = arith.constant 0 : index
    %45 = vector.load %arg6[%c0_43, %c0_44] : memref<1x8xf32, #tpu.memory_space<vmem>>, vector<1x8xf32>
    %46 = arith.mulf %20, %20 : vector<128x8xf32>
    %cst_45 = arith.constant dense<0.000000e+00> : vector<1x128xf32>
    %47 = tpu.matmul %45, %46, %cst_45 {dimension_numbers = #tpu.dot_dimension_numbers<[1], [1], [0], [0], [0, 0, 1, 0], [], []>} : vector<1x8xf32>, vector<128x8xf32>, vector<1x128xf32> -> vector<1x128xf32>
    %c0_46 = arith.constant 0 : index
    %c0_47 = arith.constant 0 : index
    %48 = vector.load %arg8[%c0_46, %c0_47] : memref<1x128xf32, #tpu.memory_space<vmem>>, vector<1x128xf32>
    tpu.vector_store %arg8[%c0_46, %c0_47], %47 {strides = array<i32>} : memref<1x128xf32, #tpu.memory_space<vmem>>, vector<1x128xf32>,
    return
  }
  func.func @transform_0(%arg0: i32) -> (i32, i32) {
    %c0_i32 = arith.constant 0 : i32
    %c0_i32_0 = arith.constant 0 : i32
    return %arg0, %c0_i32 : i32, i32
  }
  func.func @transform_1(%arg0: i32) -> (i32, i32) {
    %c1_i32 = arith.constant 1 : i32
    %0 = arith.addi %arg0, %c1_i32 : i32
    %c16_i32 = arith.constant 16 : i32
    %1 = arith.muli %0, %c16_i32 : i32
    %c0_i32 = arith.constant 0 : i32
    %c0_i32_0 = arith.constant 0 : i32
    return %1, %c0_i32 : i32, i32
  }
  func.func @transform_2(%arg0: i32) -> (i32, i32) {
    %c0_i32 = arith.constant 0 : i32
    %c0_i32_0 = arith.constant 0 : i32
    %c0_i32_1 = arith.constant 0 : i32
    return %c0_i32, %c0_i32_0 : i32, i32
  }
  func.func @transform_3(%arg0: i32) -> (i32, i32, i32) {
    %c0_i32 = arith.constant 0 : i32
    %c0_i32_0 = arith.constant 0 : i32
    %c0_i32_1 = arith.constant 0 : i32
    %c0_i32_2 = arith.constant 0 : i32
    return %c0_i32, %c0_i32_0, %c0_i32_1 : i32, i32, i32
  }
  func.func @transform_4(%arg0: i32) -> (i32, i32) {
    %c0_i32 = arith.constant 0 : i32
    %c0_i32_0 = arith.constant 0 : i32
    %c0_i32_1 = arith.constant 0 : i32
    return %c0_i32, %c0_i32_0 : i32, i32
  }
  func.func @transform_5(%arg0: i32) -> (i32, i32) {
    %c0_i32 = arith.constant 0 : i32
    %c0_i32_0 = arith.constant 0 : i32
    %c0_i32_1 = arith.constant 0 : i32
    return %c0_i32, %c0_i32_0 : i32, i32
  }
  func.func @transform_6(%arg0: i32) -> (i32, i32) {
    %c0_i32 = arith.constant 0 : i32
    %c0_i32_0 = arith.constant 0 : i32
    return %c0_i32, %arg0 : i32, i32
  }
  func.func @transform_7(%arg0: i32) -> (i32, i32) {
    %c0_i32 = arith.constant 0 : i32
    %c0_i32_0 = arith.constant 0 : i32
    return %c0_i32, %arg0 : i32, i32
  }
}

</mosaic_0001>

<bundles_post_ra>
// kernel: _lambda_.1
= control target key start
LH: loop header
LB: loop body
LE: loop exit
PB: predicated region body
PF: predicated region fallthrough
CT: control target
= control target key end

     0   :  { %vm63_vm0 = vcmask 130048   ;;  %vm551_vm1 = vcmask 64512   ;;  %vm1645_vm2 = vmmov 0   ;;  %s2174_s3 = inlined_call_operand.vmem [shape: f32[2,8,16], index: 3, kind: input, shape index: {}]   ;;  %s2175_s0 = inlined_call_operand.vmem [shape: f32[136,16], index: 0, kind: input, shape index: {}, may-alias: {0,1}]   ;;  %s2176_s2 = inlined_call_operand.vmem [shape: f32[2,16], index: 2, kind: input, shape index: {}]   ;;  %s2177_s1 = inlined_call_operand.vmem [shape: f32[136,16], index: 1, kind: input, shape index: {}, may-alias: {0,1}]   ;;  %s2178_s5 = inlined_call_operand.vmem [shape: f32[1,8], index: 5, kind: input, shape index: {}]   ;;  %s2179_s4 = inlined_call_operand.vmem [shape: f32[1,16], index: 4, kind: input, shape index: {}]   ;;  %s2180_s7 = inlined_call_operand.vmem [shape: f32[1,128], index: 7, kind: output, shape index: {1}]   ;;  %s2181_s6 = inlined_call_operand.vmem [shape: f32[1,128], index: 6, kind: output, shape index: {0}]  }
   0x1   :  { %v1689_v0 = vld [vmem:[%s2174_s3 + $0x8] sm:$0xff]  ;;  %v1694_v1 = vld [vmem:[%s2174_s3] sm:$0xff]  ;;  %v49_v4 = vld [vmem:[%s2175_s0 + $0x10] sm:$0xff] }
   0x2   :  { %v47_v2 = vld [vmem:[%s2175_s0] sm:$0xff]  ;;  %1468 = vmatprep.subr.msk.mxu0 %vm63_vm0, %v1689_v0  ;;  %1494 = vmatprep.subr.msk.mxu1 %vm63_vm0, %v1694_v1  ;;  %v48_v3 = vld [vmem:[%s2175_s0 + $0x8] sm:$0xff]  ;;  %v50_v5 = vld [vmem:[%s2175_s0 + $0x18] sm:$0xff]  ;;  %66 = vst.msk [vmem:[#allocation2 + $0x10] sm:$0xff] %vm63_vm0, %v49_v4 }
   0x3   :  { %64 = vst.msk [vmem:[#allocation2] sm:$0xff] %vm63_vm0, %v47_v2  ;;  %1469 = vmatpush3.xpose.msk.msra.mxu0 %vm63_vm0, %v1689_v0  ;;  %1495 = vmatpush3.xpose.msk.msra.mxu1 %vm63_vm0, %v1694_v1  ;;  %65 = vst.msk [vmem:[#allocation2 + $0x8] sm:$0xff] %vm63_vm0, %v48_v3  ;;  %v51_v6 = vld [vmem:[%s2175_s0 + $0x20] sm:$0xff]  ;;  %v52_v7 = vld [vmem:[%s2175_s0 + $0x28] sm:$0xff] }
   0x4   :  { %67 = vst.msk [vmem:[#allocation2 + $0x18] sm:$0xff] %vm63_vm0, %v50_v5  ;;  %68 = vst.msk [vmem:[#allocation2 + $0x20] sm:$0xff] %vm63_vm0, %v51_v6  ;;  %v53_v8 = vld [vmem:[%s2175_s0 + $0x30] sm:$0xff]  ;;  %v54_v9 = vld [vmem:[%s2175_s0 + $0x38] sm:$0xff]  ;;  %1520 = vmatprep.subr.mxu0 %v1694_v1  ;;  %1546 = vmatprep.subr.mxu1 %v1689_v0 }
   0x5   :  { %v1738_v10 = vld [vmem:[%s2176_s2] ss:$0 sm:$0xff]  ;;  %69 = vst.msk [vmem:[#allocation2 + $0x28] sm:$0xff] %vm63_vm0, %v52_v7  ;;  %70 = vst.msk [vmem:[#allocation2 + $0x30] sm:$0xff] %vm63_vm0, %v53_v8  ;;  %v56_v12 = vld [vmem:[%s2175_s0 + $0x48] sm:$0xff] }
   0x6   :  { %71 = vst.msk [vmem:[#allocation2 + $0x38] sm:$0xff] %vm63_vm0, %v54_v9  ;;  %v55_v11 = vld [vmem:[%s2175_s0 + $0x40] sm:$0xff]  ;;  %v57_v13 = vld [vmem:[%s2175_s0 + $0x50] sm:$0xff]  ;;  %73 = vst.msk [vmem:[#allocation2 + $0x48] sm:$0xff] %vm63_vm0, %v56_v12 }
   0x7   :  { %72 = vst.msk [vmem:[#allocation2 + $0x40] sm:$0xff] %vm63_vm0, %v55_v11  ;;  %74 = vst.msk [vmem:[#allocation2 + $0x50] sm:$0xff] %vm63_vm0, %v57_v13  ;;  %v58_v14 = vld [vmem:[%s2175_s0 + $0x58] sm:$0xff]  ;;  %v59_v15 = vld [vmem:[%s2175_s0 + $0x60] sm:$0xff] }
   0x8   :  { %v60_v16 = vld [vmem:[%s2175_s0 + $0x68] sm:$0xff]  ;;  %75 = vst.msk [vmem:[#allocation2 + $0x58] sm:$0xff] %vm63_vm0, %v58_v14  ;;  %76 = vst.msk [vmem:[#allocation2 + $0x60] sm:$0xff] %vm63_vm0, %v59_v15  ;;  %v61_v17 = vld [vmem:[%s2175_s0 + $0x70] sm:$0xff] }
   0x9   :  { %77 = vst.msk [vmem:[#allocation2 + $0x68] sm:$0xff] %vm63_vm0, %v60_v16  ;;  %v62_v18 = vld [vmem:[%s2175_s0 + $0x78] sm:$0xff]  ;;  %v1262_v19 = vld [vmem:[%s2177_s1 + $0x80] sm:$0xff]  ;;  %78 = vst.msk [vmem:[#allocation2 + $0x70] sm:$0xff] %vm63_vm0, %v61_v17 }
   0xa   :  { %v1779_v20 = vld [vmem:[%s2176_s2 + $0x1] ss:$0 sm:$0xff]  ;;  %79 = vst.msk [vmem:[#allocation2 + $0x78] sm:$0xff] %vm63_vm0, %v62_v18  ;;  %81 = vst.msk [vmem:[#allocation2 + $0x80] sm:$0xff] %vm63_vm0, %v1262_v19  ;;  %v83_v24 = vld [vmem:[#allocation2 + $0x8] sm:$0xff] }
   0xb   :  { %v82_v21 = vld [vmem:[#allocation2] sm:$0xff]  ;;  %v121_v26 = vld [vmem:[#allocation2 + $0x9] sm:$0xff]  ;;  %v1791_v27 = vsub.f32 %v83_v24, %v1738_v10  ;;  %v122_v28 = vld [vmem:[#allocation2 + $0x11] sm:$0xff] }
   0xc   :  { %v120_v22 = vld [vmem:[#allocation2 + $0x1] sm:$0xff]  ;;  %v1785_v23 = vsub.f32 %v82_v21, %v1738_v10  ;;  %v84_v29 = vld [vmem:[#allocation2 + $0x10] sm:$0xff]  ;;  %v1796_v30 = vsub.f32 %v121_v26, %v1779_v20  ;;  %v1799_v31 = vsub.f32 %v122_v28, %v1779_v20  ;;  %v123_v33 = vld [vmem:[#allocation2 + $0x19] sm:$0xff] }
   0xd   :  { %v1788_v25 = vsub.f32 %v120_v22, %v1779_v20  ;;  %v1802_v32 = vsub.f32 %v84_v29, %v1738_v10  ;;  %v85_v34 = vld [vmem:[#allocation2 + $0x18] sm:$0xff]  ;;  %v124_v35 = vld [vmem:[#allocation2 + $0x21] sm:$0xff]  ;;  %v1816_v38 = vsub.f32 %v123_v33, %v1779_v20  ;;  %v125_v42 = vld [vmem:[#allocation2 + $0x29] sm:$0xff] }
   0xe   :  { %1496 = vmatprep.mubr.msk.f32.mxu1 %vm63_vm0, %v1785_v23  ;;  %v1809_v36 = vsub.f32 %v85_v34, %v1738_v10  ;;  %v86_v37 = vld [vmem:[#allocation2 + $0x20] sm:$0xff]  ;;  %v87_v40 = vld [vmem:[#allocation2 + $0x28] sm:$0xff]  ;;  %v1824_v41 = vsub.f32 %v124_v35, %v1779_v20  ;;  %v88_v43 = vld [vmem:[#allocation2 + $0x30] sm:$0xff]  ;;  %v1838_v46 = vsub.f32 %v125_v42, %v1779_v20 }
   0xf   :  { %1470 = vmatprep.mubr.msk.f32.mxu0 %vm63_vm0, %v1788_v25  ;;  %1497 = vmatmul.mubr.msk.f32.vlgmr.msra.gmra.mxu1 %vm63_vm0, %v1791_v27  ;;  %v1819_v39 = vsub.f32 %v86_v37, %v1738_v10  ;;  %v126_v44 = vld [vmem:[#allocation2 + $0x31] sm:$0xff]  ;;  %v1831_v45 = vsub.f32 %v87_v40, %v1738_v10  ;;  %v1841_v47 = vsub.f32 %v88_v43, %v1738_v10  ;;  %v127_v50 = vld [vmem:[#allocation2 + $0x39] sm:$0xff]  ;;  %v128_v52 = vld [vmem:[#allocation2 + $0x41] sm:$0xff] }
  0x10   :  { %1471 = vmatmul.mubr.msk.f32.vlgmr.msra.gmra.mxu0 %vm63_vm0, %v1796_v30  ;;  %1499 = vmatprep.mubr.msk.f32.mxu1 %vm63_vm0, %v1802_v32  ;;  %v89_v48 = vld [vmem:[#allocation2 + $0x38] sm:$0xff]  ;;  %v1846_v49 = vsub.f32 %v126_v44, %v1779_v20  ;;  %v90_v51 = vld [vmem:[#allocation2 + $0x40] sm:$0xff]  ;;  %v1858_v54 = vsub.f32 %v127_v50, %v1779_v20  ;;  %v91_v56 = vld [vmem:[#allocation2 + $0x48] sm:$0xff]  ;;  %v1866_v57 = vsub.f32 %v128_v52, %v1779_v20 }
  0x11   :  { %1473 = vmatprep.mubr.msk.f32.mxu0 %vm63_vm0, %v1799_v31  ;;  %1521 = vmatpush3.msra.mxu0 %v1694_v1  ;;  %v1851_v53 = vsub.f32 %v89_v48, %v1738_v10  ;;  %v1861_v55 = vsub.f32 %v90_v51, %v1738_v10  ;;  %v129_v58 = vld [vmem:[#allocation2 + $0x49] sm:$0xff]  ;;  %v130_v60 = vld [vmem:[#allocation2 + $0x51] sm:$0xff]  ;;  %v1871_v61 = vsub.f32 %v91_v56, %v1738_v10  ;;  %v131_v2 = vld [vmem:[#allocation2 + $0x59] sm:$0xff] }
  0x12   :  { %1547 = vmatpush3.msra.mxu1 %v1689_v0  ;;  %v92_v59 = vld [vmem:[#allocation2 + $0x50] sm:$0xff]  ;;  %v1878_v62 = vsub.f32 %v129_v58, %v1779_v20  ;;  %v93_v0 = vld [vmem:[#allocation2 + $0x58] sm:$0xff]  ;;  %v1886_v1 = vsub.f32 %v130_v60, %v1779_v20  ;;  %v94_v3 = vld [vmem:[#allocation2 + $0x60] sm:$0xff]  ;;  %v1898_v6 = vsub.f32 %v131_v2, %v1779_v20 }
  0x13   :  { %1500 = vmatmul.mubr.msk.f32.gmra.mxu1 %vm63_vm0, %v1809_v36  ;;  %v1881_v63 = vsub.f32 %v92_v59, %v1738_v10  ;;  %v132_v4 = vld [vmem:[#allocation2 + $0x61] sm:$0xff]  ;;  %v1891_v5 = vsub.f32 %v93_v0, %v1738_v10  ;;  %v1901_v7 = vsub.f32 %v94_v3, %v1738_v10  ;;  %v133_v11 = vld [vmem:[#allocation2 + $0x69] sm:$0xff]  ;;  %v134_v13 = vld [vmem:[#allocation2 + $0x71] sm:$0xff] }
  0x14   :  { %1474 = vmatmul.mubr.msk.f32.gmra.mxu0 %vm63_vm0, %v1816_v38  ;;  %1502 = vmatprep.mubr.msk.f32.mxu1 %vm63_vm0, %v1819_v39  ;;  %v95_v8 = vld [vmem:[#allocation2 + $0x68] sm:$0xff]  ;;  %v1906_v9 = vsub.f32 %v132_v4, %v1779_v20  ;;  %v96_v12 = vld [vmem:[#allocation2 + $0x70] sm:$0xff]  ;;  %v1918_v15 = vsub.f32 %v133_v11, %v1779_v20  ;;  %v97_v17 = vld [vmem:[#allocation2 + $0x78] sm:$0xff]  ;;  %v1926_v18 = vsub.f32 %v134_v13, %v1779_v20 }
  0x15   :  { %1476 = vmatprep.mubr.msk.f32.mxu0 %vm63_vm0, %v1824_v41  ;;  %v1911_v14 = vsub.f32 %v95_v8, %v1738_v10  ;;  %v1921_v16 = vsub.f32 %v96_v12, %v1738_v10  ;;  %v135_v19 = vld [vmem:[#allocation2 + $0x79] sm:$0xff]  ;;  %v1931_v21 = vsub.f32 %v97_v17, %v1738_v10  ;;  %v1644_v10 = vmov 0.0  }
  0x16   :  { %v1938_v22 = vsub.f32 %v135_v19, %v1779_v20  ;;  %1607 = vmatprep.subr.mxu1 %v1644_v10  ;;  %1572 = vmatprep.subr.mxu0 %v1644_v10 }
  0x17   :  { %1503 = vmatmul.mubr.msk.f32.gmra.mxu1 %vm63_vm0, %v1831_v45 }
  0x18   :  { %1477 = vmatmul.mubr.msk.f32.gmra.mxu0 %vm63_vm0, %v1838_v46  ;;  %1505 = vmatprep.mubr.msk.f32.mxu1 %vm63_vm0, %v1841_v47 }
  0x19   :  { %1479 = vmatprep.mubr.msk.f32.mxu0 %vm63_vm0, %v1846_v49 }
  0x1b   :  { %1506 = vmatmul.mubr.msk.f32.gmra.mxu1 %vm63_vm0, %v1851_v53 }
  0x1c   :  { %1480 = vmatmul.mubr.msk.f32.gmra.mxu0 %vm63_vm0, %v1858_v54  ;;  %1508 = vmatprep.mubr.msk.f32.mxu1 %vm63_vm0, %v1861_v55 }
  0x1d   :  { %1482 = vmatprep.mubr.msk.f32.mxu0 %vm63_vm0, %v1866_v57 }
  0x1f   :  { %1509 = vmatmul.mubr.msk.f32.gmra.mxu1 %vm63_vm0, %v1871_v61 }
  0x20   :  { %1483 = vmatmul.mubr.msk.f32.gmra.mxu0 %vm63_vm0, %v1878_v62  ;;  %1511 = vmatprep.mubr.msk.f32.mxu1 %vm63_vm0, %v1881_v63 }
  0x21   :  { %1485 = vmatprep.mubr.msk.f32.mxu0 %vm63_vm0, %v1886_v1 }
  0x23   :  { %1512 = vmatmul.mubr.msk.f32.gmra.mxu1 %vm63_vm0, %v1891_v5 }
  0x24   :  { %1486 = vmatmul.mubr.msk.f32.gmra.mxu0 %vm63_vm0, %v1898_v6  ;;  %1514 = vmatprep.mubr.msk.f32.mxu1 %vm63_vm0, %v1901_v7 }
  0x25   :  { %1488 = vmatprep.mubr.msk.f32.mxu0 %vm63_vm0, %v1906_v9 }
  0x27   :  { %1515 = vmatmul.mubr.msk.f32.gmra.mxu1 %vm63_vm0, %v1911_v14 }
  0x28   :  { %1489 = vmatmul.mubr.msk.f32.gmra.mxu0 %vm63_vm0, %v1918_v15  ;;  %1517 = vmatprep.mubr.msk.f32.mxu1 %vm63_vm0, %v1921_v16 }
  0x29   :  { %1491 = vmatprep.mubr.msk.f32.mxu0 %vm63_vm0, %v1926_v18 }
  0x2b   :  { %1518 = vmatmul.mubr.msk.f32.gmra.mxu1 %vm63_vm0, %v1931_v21 }
  0x2c   :  { %1492 = vmatmul.mubr.msk.f32.gmra.mxu0 %vm63_vm0, %v1938_v22 }
  0xcf   :  { %v1498_v24 = vpop.f32.mrf.mxu1 }
  0xd0   :  { %v1472_v26 = vpop.f32.mrf.mxu0 }
  0xd1   :  { %v472_v28 = vpop.f32.mrf.mxu1  ;;  %v1950_v34 = vadd.f32 %v1498_v24, %v1472_v26 }
  0xd2   :  { %v276_v29 = vpop.f32.mrf.mxu0 }
  0xd3   :  { %v1948_v20 = vadd.f32 %v472_v28, %v276_v29  ;;  %v1501_v33 = vpop.f32.mrf.mxu1 }
  0xd4   :  { %v1475_v35 = vpop.f32.mrf.mxu0 }
  0xd5   :  { %1522 = vmatprep.mubr.msk.f32.mxu0 %vm551_vm1, %v1948_v20  ;;  %1548 = vmatprep.mubr.msk.f32.mxu1 %vm551_vm1, %v1948_v20  ;;  %v482_v37 = vpop.f32.mrf.mxu1  ;;  %v1962_v44 = vadd.f32 %v1501_v33, %v1475_v35 }
  0xd6   :  { %v286_v40 = vpop.f32.mrf.mxu0  ;;  %1523 = vmatmul.mubr.msk.f32.vlgmr.msra.gmra.mxu0 %vm551_vm1, %v1950_v34  ;;  %1549 = vmatmul.mubr.msk.f32.vlgmr.msra.gmra.mxu1 %vm551_vm1, %v1950_v34 }
  0xd7   :  { %v1960_v42 = vadd.f32 %v482_v37, %v286_v40  ;;  %v1504_v43 = vpop.f32.mrf.mxu1 }
  0xd8   :  { %v1478_v48 = vpop.f32.mrf.mxu0 }
  0xd9   :  { %1525 = vmatprep.mubr.msk.f32.mxu0 %vm551_vm1, %v1960_v42  ;;  %1551 = vmatprep.mubr.msk.f32.mxu1 %vm551_vm1, %v1960_v42  ;;  %v492_v50 = vpop.f32.mrf.mxu1  ;;  %v1974_v58 = vadd.f32 %v1504_v43, %v1478_v48 }
  0xda   :  { %v296_v51 = vpop.f32.mrf.mxu0  ;;  %1526 = vmatmul.mubr.msk.f32.gmra.mxu0 %vm551_vm1, %v1962_v44  ;;  %1552 = vmatmul.mubr.msk.f32.gmra.mxu1 %vm551_vm1, %v1962_v44 }
  0xdb   :  { %v1972_v52 = vadd.f32 %v492_v50, %v296_v51  ;;  %v1507_v56 = vpop.f32.mrf.mxu1 }
  0xdc   :  { %v1481_v59 = vpop.f32.mrf.mxu0 }
  0xdd   :  { %1528 = vmatprep.mubr.msk.f32.mxu0 %vm551_vm1, %v1972_v52  ;;  %1554 = vmatprep.mubr.msk.f32.mxu1 %vm551_vm1, %v1972_v52  ;;  %v502_v60 = vpop.f32.mrf.mxu1  ;;  %v1986_v4 = vadd.f32 %v1507_v56, %v1481_v59 }
  0xde   :  { %v306_v0 = vpop.f32.mrf.mxu0  ;;  %1529 = vmatmul.mubr.msk.f32.gmra.mxu0 %vm551_vm1, %v1974_v58  ;;  %1555 = vmatmul.mubr.msk.f32.gmra.mxu1 %vm551_vm1, %v1974_v58 }
  0xdf   :  { %v1984_v2 = vadd.f32 %v502_v60, %v306_v0  ;;  %v1510_v3 = vpop.f32.mrf.mxu1 }
  0xe0   :  { %v1484_v8 = vpop.f32.mrf.mxu0 }
  0xe1   :  { %1531 = vmatprep.mubr.msk.f32.mxu0 %vm551_vm1, %v1984_v2  ;;  %1557 = vmatprep.mubr.msk.f32.mxu1 %vm551_vm1, %v1984_v2  ;;  %v512_v11 = vpop.f32.mrf.mxu1  ;;  %v518_v19 = vadd.f32 %v1510_v3, %v1484_v8 }
  0xe2   :  { %v316_v12 = vpop.f32.mrf.mxu0  ;;  %1532 = vmatmul.mubr.msk.f32.gmra.mxu0 %vm551_vm1, %v1986_v4  ;;  %1558 = vmatmul.mubr.msk.f32.gmra.mxu1 %vm551_vm1, %v1986_v4 }
  0xe3   :  { %v513_v13 = vadd.f32 %v512_v11, %v316_v12  ;;  %v1513_v17 = vpop.f32.mrf.mxu1 }
  0xe4   :  { %v1487_v24 = vpop.f32.mrf.mxu0 }
  0xe5   :  { %1534 = vmatprep.mubr.msk.f32.mxu0 %vm551_vm1, %v513_v13  ;;  %1560 = vmatprep.mubr.msk.f32.mxu1 %vm551_vm1, %v513_v13  ;;  %v522_v26 = vpop.f32.mrf.mxu1  ;;  %v528_v35 = vadd.f32 %v1513_v17, %v1487_v24 }
  0xe6   :  { %v326_v28 = vpop.f32.mrf.mxu0  ;;  %1535 = vmatmul.mubr.msk.f32.gmra.mxu0 %vm551_vm1, %v518_v19  ;;  %1561 = vmatmul.mubr.msk.f32.gmra.mxu1 %vm551_vm1, %v518_v19 }
  0xe7   :  { %v523_v29 = vadd.f32 %v522_v26, %v326_v28  ;;  %v1516_v33 = vpop.f32.mrf.mxu1  ;;  %v1121_v24 = vmul.f32 %v528_v35, %v528_v35  ;;  %v1119_v28 = vmul.f32 %v518_v19, %v518_v19 }
  0xe8   :  { %v1490_v37 = vpop.f32.mrf.mxu0 }
  0xe9   :  { %1537 = vmatprep.mubr.msk.f32.mxu0 %vm551_vm1, %v523_v29  ;;  %1563 = vmatprep.mubr.msk.f32.mxu1 %vm551_vm1, %v523_v29  ;;  %v532_v40 = vpop.f32.mrf.mxu1  ;;  %v538_v51 = vadd.f32 %v1516_v33, %v1490_v37  ;;  %v1120_v26 = vmul.f32 %v523_v29, %v523_v29  ;;  %v1118_v33 = vmul.f32 %v513_v13, %v513_v13 }
  0xea   :  { %v336_v43 = vpop.f32.mrf.mxu0  ;;  %1538 = vmatmul.mubr.msk.f32.gmra.mxu0 %vm551_vm1, %v528_v35  ;;  %1564 = vmatmul.mubr.msk.f32.gmra.mxu1 %vm551_vm1, %v528_v35  ;;  %v1117_v35 = vmul.f32 %v1986_v4, %v1986_v4  ;;  %v1116_v29 = vmul.f32 %v1984_v2, %v1984_v2  ;;  %v1115_v13 = vmul.f32 %v1974_v58, %v1974_v58 }
  0xeb   :  { %v533_v48 = vadd.f32 %v532_v40, %v336_v43  ;;  %v1519_v50 = vpop.f32.mrf.mxu1  ;;  %v1123_v12 = vmul.f32 %v538_v51, %v538_v51  ;;  %v1114_v4 = vmul.f32 %v1972_v52, %v1972_v52  ;;  %v1113_v2 = vmul.f32 %v1962_v44, %v1962_v44 }
  0xec   :  { %v1493_v56 = vpop.f32.mrf.mxu0  ;;  %v1112_v58 = vmul.f32 %v1960_v42, %v1960_v42  ;;  %v1111_v52 = vmul.f32 %v1950_v34, %v1950_v34  ;;  %v1110_v44 = vmul.f32 %v1948_v20, %v1948_v20  ;;  %v1109_v42 = vld [vmem:[%s2178_s5] sm:$0x1] }
  0xed   :  { %v548_v59 = vadd.f32 %v1519_v50, %v1493_v56  ;;  %1540 = vmatprep.mubr.msk.f32.mxu0 %vm551_vm1, %v533_v48  ;;  %1566 = vmatprep.mubr.msk.f32.mxu1 %vm551_vm1, %v533_v48  ;;  %v542_v60 = vpop.f32.mrf.mxu1  ;;  %v1122_v17 = vmul.f32 %v533_v48, %v533_v48 }
  0xee   :  { %v346_v0 = vpop.f32.mrf.mxu0  ;;  %1541 = vmatmul.mubr.msk.f32.gmra.mxu0 %vm551_vm1, %v538_v51  ;;  %1567 = vmatmul.mubr.msk.f32.gmra.mxu1 %vm551_vm1, %v538_v51 }
  0xef   :  { %v1125_v3 = vmul.f32 %v548_v59, %v548_v59  ;;  %v543_v8 = vadd.f32 %v542_v60, %v346_v0 }
  0xf1   :  { %1543 = vmatprep.mubr.msk.f32.mxu0 %vm551_vm1, %v543_v8  ;;  %1569 = vmatprep.mubr.msk.f32.mxu1 %vm551_vm1, %v543_v8  ;;  %v1124_v11 = vmul.f32 %v543_v8, %v543_v8 }
  0xf2   :  { %1608 = vmatpush3.xpose.msk.msra.mxu1 %vm551_vm1, %v1125_v3  ;;  %1544 = vmatmul.mubr.msk.f32.gmra.mxu0 %vm551_vm1, %v548_v59 }
  0xf3   :  { %1570 = vmatmul.mubr.msk.f32.gmra.mxu1 %vm551_vm1, %v548_v59  ;;  %1609 = vmatprep.subr.mxu1 %v1644_v10 }
  0xf4   :  { %1639 = vmatprep.mubr.msk.f32.mxu1 %vm1645_vm2, %v1644_v10  ;;  %1604 = vmatprep.mubr.msk.f32.mxu0 %vm1645_vm2, %v1644_v10 }
  0xf6   :  { %1610 = vmatpush3.xpose.msk.msra.mxu1 %vm551_vm1, %v1124_v11 }
  0xf7   :  { %1611 = vmatprep.subr.mxu1 %v1644_v10 }
  0xfa   :  { %1612 = vmatpush3.xpose.msk.msra.mxu1 %vm551_vm1, %v1123_v12 }
  0xfb   :  { %1613 = vmatprep.subr.mxu1 %v1644_v10 }
  0xfe   :  { %1614 = vmatpush3.xpose.msk.msra.mxu1 %vm551_vm1, %v1122_v17 }
  0xff   :  { %1615 = vmatprep.subr.mxu1 %v1644_v10 }
 0x102   :  { %1616 = vmatpush3.xpose.msk.msra.mxu1 %vm551_vm1, %v1121_v24 }
 0x103   :  { %1617 = vmatprep.subr.mxu1 %v1644_v10 }
 0x106   :  { %1618 = vmatpush3.xpose.msk.msra.mxu1 %vm551_vm1, %v1120_v26 }
 0x107   :  { %1619 = vmatprep.subr.mxu1 %v1644_v10 }
 0x10a   :  { %1620 = vmatpush3.xpose.msk.msra.mxu1 %vm551_vm1, %v1119_v28 }
 0x10b   :  { %1621 = vmatprep.subr.mxu1 %v1644_v10 }
 0x10e   :  { %1622 = vmatpush3.xpose.msk.msra.mxu1 %vm551_vm1, %v1118_v33 }
 0x10f   :  { %1623 = vmatprep.subr.mxu1 %v1644_v10 }
 0x112   :  { %1624 = vmatpush3.xpose.msk.msra.mxu1 %vm551_vm1, %v1117_v35 }
 0x113   :  { %1625 = vmatprep.subr.mxu1 %v1644_v10 }
 0x116   :  { %1626 = vmatpush3.xpose.msk.msra.mxu1 %vm551_vm1, %v1116_v29 }
 0x117   :  { %1627 = vmatprep.subr.mxu1 %v1644_v10 }
 0x11a   :  { %1628 = vmatpush3.xpose.msk.msra.mxu1 %vm551_vm1, %v1115_v13 }
 0x11b   :  { %1629 = vmatprep.subr.mxu1 %v1644_v10 }
 0x11e   :  { %1630 = vmatpush3.xpose.msk.msra.mxu1 %vm551_vm1, %v1114_v4 }
 0x11f   :  { %1631 = vmatprep.subr.mxu1 %v1644_v10 }
 0x122   :  { %1632 = vmatpush3.xpose.msk.msra.mxu1 %vm551_vm1, %v1113_v2 }
 0x123   :  { %1633 = vmatprep.subr.mxu1 %v1644_v10 }
 0x126   :  { %1634 = vmatpush3.xpose.msk.msra.mxu1 %vm551_vm1, %v1112_v58 }
 0x127   :  { %1635 = vmatprep.subr.mxu1 %v1644_v10 }
 0x12a   :  { %1636 = vmatpush3.xpose.msk.msra.mxu1 %vm551_vm1, %v1111_v52 }
 0x12b   :  { %1637 = vmatprep.subr.mxu1 %v1644_v10 }
 0x12e   :  { %1638 = vmatpush3.xpose.msk.msra.mxu1 %vm551_vm1, %v1110_v44 }
 0x131   :  { %1640 = vmatmul.mubr.msk.f32.vlgmr.msra.gmra.mxu1 %vm551_vm1, %v1109_v42 }
 0x196   :  { %v1524_v34 = vpop.f32.mrf.mxu0  ;;  %v1550_v19 = vpop.f32.mrf.mxu1 }
 0x197   :  { %v746_v37 = vsub.f32 %v1791_v27, %v1524_v34  ;;  %v939_v40 = vsub.f32 %v1796_v30, %v1550_v19 }
 0x198   :  { %v666_v20 = vpop.f32.mrf.mxu0  ;;  %v859_v43 = vpop.f32.mrf.mxu1 }
 0x199   :  { %v762_v48 = vmul.f32 %v746_v37, %v746_v37  ;;  %v955_v50 = vmul.f32 %v939_v40, %v939_v40  ;;  %v745_v51 = vsub.f32 %v1785_v23, %v666_v20  ;;  %v938_v56 = vsub.f32 %v1788_v25, %v859_v43 }
 0x19a   :  { %v1527_v59 = vpop.f32.mrf.mxu0  ;;  %v1553_v60 = vpop.f32.mrf.mxu1 }
 0x19b   :  { %v2069_v0 = vadd.f32 %v955_v50, %v762_v48  ;;  %v761_v3 = vmul.f32 %v745_v51, %v745_v51  ;;  %v954_v8 = vmul.f32 %v938_v56, %v938_v56  ;;  %v748_v11 = vsub.f32 %v1809_v36, %v1527_v59 }
 0x19c   :  { %v941_v27 = vsub.f32 %v1816_v38, %v1553_v60  ;;  %v676_v12 = vpop.f32.mrf.mxu0  ;;  %v869_v30 = vpop.f32.mrf.mxu1 }
 0x19d   :  { %v2073_v17 = vadd.f32 %v954_v8, %v761_v3  ;;  %v764_v24 = vmul.f32 %v748_v11, %v748_v11  ;;  %v747_v26 = vsub.f32 %v1802_v32, %v676_v12  ;;  %v940_v23 = vsub.f32 %v1799_v31, %v869_v30 }
 0x19e   :  { %v957_v25 = vmul.f32 %v941_v27, %v941_v27  ;;  %v2077_v28 = vpop.f32.mrf.mxu0  ;;  %v2079_v33 = vpop.f32.mrf.mxu1 }
 0x19f   :  { %v763_v35 = vmul.f32 %v747_v26, %v747_v26  ;;  %v956_v29 = vmul.f32 %v940_v23, %v940_v23 }
 0x1a0   :  { %v2081_v13 = vadd.f32 %v957_v25, %v764_v24  ;;  %v2083_v36 = vpop.f32.mrf.mxu0  ;;  %v2085_v38 = vpop.f32.mrf.mxu1 }
 0x1a1   :  { %v2087_v4 = vadd.f32 %v956_v29, %v763_v35 }
 0x1a2   :  { %v2089_v2 = vpop.f32.mrf.mxu0  ;;  %v2091_v32 = vpop.f32.mrf.mxu1 }
 0x1a4   :  { %v2093_v31 = vpop.f32.mrf.mxu0  ;;  %v2095_v58 = vpop.f32.mrf.mxu1 }
 0x1a6   :  { %v1536_v52 = vpop.f32.mrf.mxu0  ;;  %v1562_v44 = vpop.f32.mrf.mxu1 }
 0x1a8   :  { %v706_v42 = vpop.f32.mrf.mxu0  ;;  %v899_v34 = vpop.f32.mrf.mxu1 }
 0x1aa   :  { %v1539_v19 = vpop.f32.mrf.mxu0  ;;  %v1565_v37 = vpop.f32.mrf.mxu1 }
 0x1ac   :  { %v716_v40 = vpop.f32.mrf.mxu0  ;;  %v909_v20 = vpop.f32.mrf.mxu1 }
 0x1ae   :  { %v1542_v43 = vpop.f32.mrf.mxu0  ;;  %v1568_v48 = vpop.f32.mrf.mxu1 }
 0x1af   :  { %v758_v26 = vsub.f32 %v1911_v14, %v1542_v43  ;;  %v951_v23 = vsub.f32 %v1918_v15, %v1568_v48  ;;  %v756_v14 = vsub.f32 %v1891_v5, %v1539_v19  ;;  %v949_v15 = vsub.f32 %v1898_v6, %v1565_v37 }
 0x1b0   :  { %v726_v50 = vpop.f32.mrf.mxu0  ;;  %v919_v51 = vpop.f32.mrf.mxu1  ;;  %v754_v5 = vsub.f32 %v1871_v61, %v1536_v52  ;;  %v947_v6 = vsub.f32 %v1878_v62, %v1562_v44  ;;  %v752_v61 = vsub.f32 %v1851_v53, %v2089_v2  ;;  %v945_v62 = vsub.f32 %v1858_v54, %v2091_v32 }
 0x1b1   :  { %v944_v53 = vsub.f32 %v1846_v49, %v2095_v58  ;;  %v750_v54 = vsub.f32 %v1831_v45, %v2077_v28  ;;  %v943_v32 = vsub.f32 %v1838_v46, %v2079_v33  ;;  %v942_v45 = vsub.f32 %v1824_v41, %v2085_v38 }
 0x1b2   :  { %v1545_v56 = vpop.f32.mrf.mxu0 }
 0x1b3   :  { %v760_v59 = vsub.f32 %v1931_v21, %v1545_v56  ;;  %v1571_v60 = vpop.f32.mrf.mxu1  ;;  %v774_v21 = vmul.f32 %v758_v26, %v758_v26  ;;  %v757_v56 = vsub.f32 %v1901_v7, %v726_v50  ;;  %v965_v7 = vmul.f32 %v949_v15, %v949_v15 }
 0x1b4   :  { %v953_v3 = vsub.f32 %v1938_v22, %v1571_v60  ;;  %v736_v8 = vpop.f32.mrf.mxu0  ;;  %v967_v22 = vmul.f32 %v951_v23, %v951_v23  ;;  %v772_v60 = vmul.f32 %v756_v14, %v756_v14  ;;  %v948_v50 = vsub.f32 %v1886_v1, %v909_v20 }
 0x1b5   :  { %v776_v11 = vmul.f32 %v760_v59, %v760_v59  ;;  %v759_v27 = vsub.f32 %v1921_v16, %v736_v8  ;;  %v929_v12 = vpop.f32.mrf.mxu1  ;;  %v950_v16 = vsub.f32 %v1906_v9, %v919_v51  ;;  %v773_v43 = vmul.f32 %v757_v56, %v757_v56 }
 0x1b6   :  { %v969_v30 = vmul.f32 %v953_v3, %v953_v3  ;;  %v952_v24 = vsub.f32 %v1926_v18, %v929_v12  ;;  %v983_v18 = vadd.f32 %v967_v22, %v774_v21  ;;  %v755_v9 = vsub.f32 %v1881_v63, %v716_v40 }
 0x1b7   :  { %v775_v35 = vmul.f32 %v759_v27, %v759_v27  ;;  %v966_v48 = vmul.f32 %v950_v16, %v950_v16  ;;  %v981_v19 = vadd.f32 %v965_v7, %v772_v60  ;;  %v964_v3 = vmul.f32 %v948_v50, %v948_v50 }
 0x1b8   :  { %v985_v25 = vadd.f32 %v969_v30, %v776_v11  ;;  %v968_v29 = vmul.f32 %v952_v24, %v952_v24  ;;  %v771_v37 = vmul.f32 %v755_v9, %v755_v9  ;;  %v770_v8 = vmul.f32 %v754_v5, %v754_v5 }
 0x1b9   :  { %v982_v51 = vadd.f32 %v966_v48, %v773_v43  ;;  %v963_v63 = vmul.f32 %v947_v6, %v947_v6  ;;  %v753_v1 = vsub.f32 %v1861_v55, %v706_v42  ;;  %v946_v40 = vsub.f32 %v1866_v57, %v899_v34 }
 0x1ba   :  { %1573 = vmatpush3.xpose.msk.msra.mxu0 %vm63_vm0, %v985_v25  ;;  %v984_v59 = vadd.f32 %v968_v29, %v775_v35  ;;  %v980_v20 = vadd.f32 %v964_v3, %v771_v37  ;;  %v768_v27 = vmul.f32 %v752_v61, %v752_v61  ;;  %v961_v55 = vmul.f32 %v945_v62, %v945_v62 }
 0x1bb   :  { %1574 = vmatprep.subr.mxu0 %v1644_v10  ;;  %v979_v52 = vadd.f32 %v963_v63, %v770_v8  ;;  %v769_v44 = vmul.f32 %v753_v1, %v753_v1  ;;  %v962_v11 = vmul.f32 %v946_v40, %v946_v40  ;;  %v751_v57 = vsub.f32 %v1841_v47, %v2093_v31 }
 0x1bc   :  { %v977_v42 = vadd.f32 %v961_v55, %v768_v27  ;;  %v960_v12 = vmul.f32 %v944_v53, %v944_v53  ;;  %v766_v47 = vmul.f32 %v750_v54, %v750_v54  ;;  %v959_v49 = vmul.f32 %v943_v32, %v943_v32 }
 0x1bd   :  { %v978_v2 = vadd.f32 %v962_v11, %v769_v44  ;;  %v767_v34 = vmul.f32 %v751_v57, %v751_v57  ;;  %v749_v31 = vsub.f32 %v1819_v39, %v2083_v36  ;;  %v958_v58 = vmul.f32 %v942_v45, %v942_v45  ;;  %v986_v39 = vld [vmem:[%s2179_s4] sm:$0x1] }
 0x1be   :  { %1575 = vmatpush3.xpose.msk.msra.mxu0 %vm63_vm0, %v984_v59  ;;  %v975_v46 = vadd.f32 %v959_v49, %v766_v47 }
 0x1bf   :  { %1576 = vmatprep.subr.mxu0 %v1644_v10  ;;  %v976_v28 = vadd.f32 %v960_v12, %v767_v34  ;;  %v765_v33 = vmul.f32 %v749_v31, %v749_v31 }
 0x1c1   :  { %v974_v30 = vadd.f32 %v958_v58, %v765_v33 }
 0x1c2   :  { %1577 = vmatpush3.xpose.msk.msra.mxu0 %vm63_vm0, %v983_v18 }
 0x1c3   :  { %1578 = vmatprep.subr.mxu0 %v1644_v10 }
 0x1c6   :  { %1579 = vmatpush3.xpose.msk.msra.mxu0 %vm63_vm0, %v982_v51 }
 0x1c7   :  { %1580 = vmatprep.subr.mxu0 %v1644_v10 }
 0x1ca   :  { %1581 = vmatpush3.xpose.msk.msra.mxu0 %vm63_vm0, %v981_v19 }
 0x1cb   :  { %1582 = vmatprep.subr.mxu0 %v1644_v10 }
 0x1ce   :  { %1583 = vmatpush3.xpose.msk.msra.mxu0 %vm63_vm0, %v980_v20 }
 0x1cf   :  { %1584 = vmatprep.subr.mxu0 %v1644_v10 }
 0x1d2   :  { %1585 = vmatpush3.xpose.msk.msra.mxu0 %vm63_vm0, %v979_v52 }
 0x1d3   :  { %1586 = vmatprep.subr.mxu0 %v1644_v10 }
 0x1d6   :  { %1587 = vmatpush3.xpose.msk.msra.mxu0 %vm63_vm0, %v978_v2 }
 0x1d7   :  { %1588 = vmatprep.subr.mxu0 %v1644_v10 }
 0x1da   :  { %1589 = vmatpush3.xpose.msk.msra.mxu0 %vm63_vm0, %v977_v42 }
 0x1db   :  { %1590 = vmatprep.subr.mxu0 %v1644_v10 }
 0x1de   :  { %1591 = vmatpush3.xpose.msk.msra.mxu0 %vm63_vm0, %v976_v28 }
 0x1df   :  { %1592 = vmatprep.subr.mxu0 %v1644_v10 }
 0x1e2   :  { %1593 = vmatpush3.xpose.msk.msra.mxu0 %vm63_vm0, %v975_v46 }
 0x1e3   :  { %1594 = vmatprep.subr.mxu0 %v1644_v10 }
 0x1e6   :  { %1595 = vmatpush3.xpose.msk.msra.mxu0 %vm63_vm0, %v974_v30 }
 0x1e7   :  { %1596 = vmatprep.subr.mxu0 %v1644_v10 }
 0x1ea   :  { %1597 = vmatpush3.xpose.msk.msra.mxu0 %vm63_vm0, %v2081_v13 }
 0x1eb   :  { %1598 = vmatprep.subr.mxu0 %v1644_v10 }
 0x1ee   :  { %1599 = vmatpush3.xpose.msk.msra.mxu0 %vm63_vm0, %v2087_v4 }
 0x1ef   :  { %1600 = vmatprep.subr.mxu0 %v1644_v10 }
 0x1f1   :  { %v1243_v41 = vpop.f32.mrf.mxu1 }
 0x1f2   :  { %1601 = vmatpush3.xpose.msk.msra.mxu0 %vm63_vm0, %v2069_v0  ;;  %1247 = vst [vmem:[%s2180_s7] sm:$0x1] %v1243_v41 }
 0x1f3   :  { %1602 = vmatprep.subr.mxu0 %v1644_v10  ;;  %v1641_v13 = vpop.f32.mrf.mxu1 }
 0x1f6   :  { %1603 = vmatpush3.xpose.msk.msra.mxu0 %vm63_vm0, %v2073_v17 }
 0x1f9   :  { %1605 = vmatmul.mubr.msk.f32.vlgmr.msra.gmra.mxu0 %vm63_vm0, %v986_v39 }
 0x2b9   :  { %v1104_v36 = vpop.f32.mrf.mxu0 }
 0x2ba   :  { %1108 = vst [vmem:[%s2181_s6] sm:$0x1] %v1104_v36 }
 0x2bb   :  { %v1606_v10 = vpop.f32.mrf.mxu0 }

</bundles_post_ra>
